<compile_context>
chip_gen: v6e
topology: v6e:2x2x1
jax: 0.10.0
libtpu: 0.0.40
codegen_flags: <defaults>
</compile_context>

<pallas_src>
import functools
import math

import jax
import jax.numpy as jnp
from jax.experimental import pallas as pl
from jax.experimental.pallas import tpu as pltpu


def _triplet_loss_kernel(a_ref, p_ref, n_ref, o_ref, *, margin, batch, ni, k, d):
    c = pl.program_id(0)   # outer chunk ("parallel": sharded across v7x TCs)
    i = pl.program_id(1)   # inner accumulation step ("arbitrary")
    tb, dw = a_ref.shape   # block rows (packed rows), packed row width k*d

    @pl.when(i == 0)
    def _init():
        o_ref[...] = jnp.zeros_like(o_ref)

    a = a_ref[...].astype(jnp.float32)
    p = p_ref[...].astype(jnp.float32)
    n = n_ref[...].astype(jnp.float32)

    dp = a - p
    dn = a - n
    # Fused: (a-p)^2 - (a-n)^2, reduced once per (packed) row below.
    diff = dp * dp - dn * dn                                     # (tb, dw) f32

    # Packed-row index of each block row.  Rows past the true (packed) batch
    # — the partial last tile and the clamped duplicate tiles of the odd-
    # tile-count chunk split — are masked out BEFORE any accumulation, so
    # garbage (even NaN/Inf) in padded blocks never reaches the output.
    row0 = (c * ni + i) * tb
    valid = (row0 + jax.lax.broadcasted_iota(jnp.int32, (tb, 1), 0)) < batch

    if k == 1:
        dist = jnp.sum(diff, axis=1, keepdims=True)              # (tb, 1)
        losses = jnp.where(valid, jnp.maximum(dist + margin, 0.0), 0.0)
        total = jnp.sum(losses, axis=0, keepdims=True)           # (1, 1)
    else:
        # Lane-dense packed layout: each VMEM row holds k original rows of
        # width d.  Exact-f32 segmented reduce: per segment, a VPU range-mask
        # select followed by an XLU row reduce.  (An MXU 0/1-matrix matmul is
        # cheaper still but would depend on MXU f32 precision.)
        lane = jax.lax.broadcasted_iota(jnp.int32, (tb, dw), 1)
        total = jnp.zeros((1, 1), jnp.float32)
        for j in range(k):
            in_seg = jnp.logical_and(lane >= j * d, lane < (j + 1) * d)
            dist_j = jnp.sum(jnp.where(in_seg, diff, 0.0),
                             axis=1, keepdims=True)              # (tb, 1)
            loss_j = jnp.where(valid, jnp.maximum(dist_j + margin, 0.0), 0.0)
            total = total + jnp.sum(loss_j, axis=0, keepdims=True)

    # Scalar accumulate into the per-chunk (1, 1) output block (resident in
    # VMEM across the inner axis since its index map ignores `i`).
    o_ref[...] += total


def triplet_loss(anchor, positive, negative, margin=1.0):
    """Pallas TPU implementation of TripletLoss.forward.

    anchor, positive, negative: (B, D) arrays (f32 or bf16 — pass bf16 to
    halve HBM read traffic; this kernel is HBM-bandwidth bound).
    Returns a scalar float32 matching `losses.mean()` of the PyTorch module.
    """
    assert anchor.shape == positive.shape == negative.shape
    assert anchor.ndim == 2
    B, D = anchor.shape
    itemsize = max(jnp.dtype(x.dtype).itemsize
                   for x in (anchor, positive, negative))

    # ---- lane-dense packing for small / non-128-multiple feature dims ----
    # (B, D) -> (B//k, k*D) is a free row-major reshape (no HBM copy); each
    # packed row carries k original rows, reduced per-segment in-kernel.
    k = 1
    if D % 128 != 0:
        cand = 128 // math.gcd(D, 128)
        if 1 < cand <= 16 and B % cand == 0 and cand * D <= 2048:
            k = cand
    Bp, Dw = B // k, k * D
    if k > 1:
        anchor = anchor.reshape(Bp, Dw)
        positive = positive.reshape(Bp, Dw)
        negative = negative.reshape(Bp, Dw)

    # ---- per-generation tile / VMEM sizing -------------------------------
    try:
        vmem_cap = int(getattr(pltpu.get_tpu_info(), "vmem_capacity_bytes",
                               64 * 1024 * 1024))
    except Exception:
        vmem_cap = 64 * 1024 * 1024          # conservative (v7x-safe) default
    if vmem_cap >= 96 * 1024 * 1024:         # v5e / v6e: 128 MiB VMEM
        target_tile_bytes = 8 * 1024 * 1024
        vmem_limit = 96 * 1024 * 1024
    else:                                    # v7x: 64 MiB per TensorCore
        target_tile_bytes = 4 * 1024 * 1024
        vmem_limit = 48 * 1024 * 1024

    dw_pad = -(-Dw // 128) * 128             # lane-padded VMEM row width
    row_bytes = dw_pad * itemsize
    # 3 inputs x 2 pipeline buffers, plus headroom for the f32 upcast temps.
    per_row_vmem = 3 * 2 * row_bytes + 4 * dw_pad * 4

    tb = max(1, target_tile_bytes // row_bytes)
    tb = min(tb, max(8, (3 * vmem_limit // 4) // per_row_vmem))
    tb = max(8, (tb // 8) * 8)
    if tb >= Bp:
        tb = Bp                              # single tile == full (packed) batch
    n_tiles = -(-Bp // tb)                   # ceil-div

    # Two chunks whenever possible (keeps both v7x TensorCores busy); the
    # clamped index_map + row mask make the odd-tile-count case safe.
    nc = 2 if n_tiles >= 2 else 1
    ni = -(-n_tiles // nc)

    kernel = functools.partial(
        _triplet_loss_kernel,
        margin=float(margin), batch=Bp, ni=ni, k=k, d=D,
    )

    def in_map(c, i):
        # Clamp so the last (duplicate) steps of an odd split never read OOB.
        return (jnp.minimum(c * ni + i, n_tiles - 1), 0)

    partials = pl.pallas_call(
        kernel,
        out_shape=jax.ShapeDtypeStruct((nc, 1, 1), jnp.float32),
        grid=(nc, ni),
        in_specs=[
            pl.BlockSpec((tb, Dw), in_map),
            pl.BlockSpec((tb, Dw), in_map),
            pl.BlockSpec((tb, Dw), in_map),
        ],
        out_specs=pl.BlockSpec((None, 1, 1), lambda c, i: (c, 0, 0)),
        compiler_params=pltpu.CompilerParams(
            dimension_semantics=("parallel", "arbitrary"),
            vmem_limit_bytes=int(vmem_limit),
        ),
    )(anchor, positive, negative)

    # Tiny final reduction (nc scalars) + mean over the true batch size.
    return jnp.sum(partials) / jnp.float32(B)


if __name__ == "__main__":
    key = jax.random.PRNGKey(0)
    k_a, k_p, k_n = jax.random.split(key, 3)

    B, D = 8, 32  # small embedding batch (exercises the lane-dense packed path)
    anchor = jax.random.normal(k_a, (B, D), dtype=jnp.float32)
    positive = jax.random.normal(k_p, (B, D), dtype=jnp.float32)
    negative = jax.random.normal(k_n, (B, D), dtype=jnp.float32)

    loss = triplet_loss(anchor, positive, negative, margin=1.0)
    jax.block_until_ready(loss)

    # Pure-JAX reference (same math as the PyTorch module).
    dp = jnp.sum((anchor - positive) ** 2, axis=1)
    dn = jnp.sum((anchor - negative) ** 2, axis=1)
    ref = jnp.mean(jnp.maximum(dp - dn + 1.0, 0.0))
    assert jnp.allclose(loss, ref, atol=1e-5, rtol=1e-5), (loss, ref)

    print("KERNEL_OK")
</pallas_src>

<mosaic_0001>
module attributes {stable_mosaic.version = 11 : i64} {
  func.func @_triplet_loss_kernel(%arg0: i32, %arg1: i32, %arg2: memref<2x128xf32, #tpu.memory_space<vmem>>, %arg3: memref<2x128xf32, #tpu.memory_space<vmem>>, %arg4: memref<2x128xf32, #tpu.memory_space<vmem>>, %arg5: memref<1x1x1xf32, #tpu.memory_space<vmem>>) attributes {dimension_semantics = [#tpu.dimension_semantics<parallel>, #tpu.dimension_semantics<arbitrary>], iteration_bounds = array<i64: 1, 1>, scalar_prefetch = 0 : i64, scratch_operands = 0 : i64, tpu.core_type = #tpu.core_type<tc>, window_params = [{transform_indices = @transform_0, window_bounds = array<i64: 2, 128>}, {transform_indices = @transform_1, window_bounds = array<i64: 2, 128>}, {transform_indices = @transform_2, window_bounds = array<i64: 2, 128>}, {transform_indices = @transform_3, window_bounds = array<i64: 1, 1, 1>}]} {
    %c0_i32 = arith.constant 0 : i32
    %0 = arith.cmpi eq, %arg1, %c0_i32 : i32
    %1 = arith.extui %0 : i1 to i32
    %c0_i32_0 = arith.constant 0 : i32
    %2 = arith.cmpi ne, %1, %c0_i32_0 : i32
    scf.if %2 {
      %cst_41 = arith.constant 0.000000e+00 : f32
      %99 = vector.broadcast %cst_41 : f32 to vector<1x1xf32>
      %c0_42 = arith.constant 0 : index
      %c0_43 = arith.constant 0 : index
      %c0_44 = arith.constant 0 : index
      %100 = vector.load %arg5[%c0_42, %c0_43, %c0_44] : memref<1x1x1xf32, #tpu.memory_space<vmem>>, vector<1x1x1xf32>
      %101 = vector.shape_cast %100 : vector<1x1x1xf32> to vector<1x1xf32>
      %102 = vector.shape_cast %99 : vector<1x1xf32> to vector<1x1x1xf32>
      tpu.vector_store %arg5[%c0_42, %c0_43, %c0_44], %102 {strides = array<i32>} : memref<1x1x1xf32, #tpu.memory_space<vmem>>, vector<1x1x1xf32>,
    } else {
    }
    %c0 = arith.constant 0 : index
    %c0_1 = arith.constant 0 : index
    %3 = vector.load %arg2[%c0, %c0_1] : memref<2x128xf32, #tpu.memory_space<vmem>>, vector<2x128xf32>
    %c0_2 = arith.constant 0 : index
    %c0_3 = arith.constant 0 : index
    %4 = vector.load %arg3[%c0_2, %c0_3] : memref<2x128xf32, #tpu.memory_space<vmem>>, vector<2x128xf32>
    %c0_4 = arith.constant 0 : index
    %c0_5 = arith.constant 0 : index
    %5 = vector.load %arg4[%c0_4, %c0_5] : memref<2x128xf32, #tpu.memory_space<vmem>>, vector<2x128xf32>
    %6 = arith.subf %3, %4 : vector<2x128xf32>
    %7 = arith.subf %3, %5 : vector<2x128xf32>
    %8 = arith.mulf %6, %6 : vector<2x128xf32>
    %9 = arith.mulf %7, %7 : vector<2x128xf32>
    %10 = arith.subf %8, %9 : vector<2x128xf32>
    %c1_i32 = arith.constant 1 : i32
    %11 = arith.muli %arg0, %c1_i32 : i32
    %12 = arith.addi %11, %arg1 : i32
    %c2_i32 = arith.constant 2 : i32
    %13 = arith.muli %12, %c2_i32 : i32
    %14 = tpu.iota {dimensions = array<i32: 0>} : vector<2x1xi32>
    %15 = vector.broadcast %13 : i32 to vector<2x1xi32>
    %16 = arith.addi %15, %14 : vector<2x1xi32>
    %c2_i32_6 = arith.constant 2 : i32
    %17 = vector.broadcast %c2_i32_6 : i32 to vector<2x1xi32>
    %18 = arith.cmpi slt, %16, %17 : vector<2x1xi32>
    %19 = tpu.iota {dimensions = array<i32: 1>} : vector<2x128xi32>
    %cst = arith.constant 0.000000e+00 : f32
    %20 = vector.broadcast %cst : f32 to vector<1x1xf32>
    %c0_i32_7 = arith.constant 0 : i32
    %21 = vector.broadcast %c0_i32_7 : i32 to vector<2x128xi32>
    %22 = arith.cmpi sge, %19, %21 : vector<2x128xi32>
    %c32_i32 = arith.constant 32 : i32
    %23 = vector.broadcast %c32_i32 : i32 to vector<2x128xi32>
    %24 = arith.cmpi slt, %19, %23 : vector<2x128xi32>
    %25 = arith.andi %22, %24 : vector<2x128xi1>
    %cst_8 = arith.constant 0.000000e+00 : f32
    %26 = vector.broadcast %cst_8 : f32 to vector<2x128xf32>
    %27 = arith.select %25, %10, %26 : vector<2x128xi1>, vector<2x128xf32>
    %cst_9 = arith.constant dense<0.000000e+00> : vector<2xf32>
    %28 = vector.multi_reduction <add>, %27, %cst_9 [1] : vector<2x128xf32> to vector<2xf32>
    %29 = vector.shape_cast %28 : vector<2xf32> to vector<2x1xf32>
    %cst_10 = arith.constant 1.000000e+00 : f32
    %30 = vector.broadcast %cst_10 : f32 to vector<2x1xf32>
    %31 = arith.addf %29, %30 : vector<2x1xf32>
    %cst_11 = arith.constant 0.000000e+00 : f32
    %32 = vector.broadcast %cst_11 : f32 to vector<2x1xf32>
    %33 = arith.maximumf %31, %32 : vector<2x1xf32>
    %cst_12 = arith.constant 0.000000e+00 : f32
    %34 = vector.broadcast %cst_12 : f32 to vector<2x1xf32>
    %35 = arith.select %18, %33, %34 : vector<2x1xi1>, vector<2x1xf32>
    %cst_13 = arith.constant dense<0.000000e+00> : vector<1xf32>
    %36 = vector.multi_reduction <add>, %35, %cst_13 [0] : vector<2x1xf32> to vector<1xf32>
    %37 = vector.shape_cast %36 : vector<1xf32> to vector<1x1xf32>
    %38 = arith.addf %20, %37 : vector<1x1xf32>
    %c32_i32_14 = arith.constant 32 : i32
    %39 = vector.broadcast %c32_i32_14 : i32 to vector<2x128xi32>
    %40 = arith.cmpi sge, %19, %39 : vector<2x128xi32>
    %c64_i32 = arith.constant 64 : i32
    %41 = vector.broadcast %c64_i32 : i32 to vector<2x128xi32>
    %42 = arith.cmpi slt, %19, %41 : vector<2x128xi32>
    %43 = arith.andi %40, %42 : vector<2x128xi1>
    %cst_15 = arith.constant 0.000000e+00 : f32
    %44 = vector.broadcast %cst_15 : f32 to vector<2x128xf32>
    %45 = arith.select %43, %10, %44 : vector<2x128xi1>, vector<2x128xf32>
    %cst_16 = arith.constant dense<0.000000e+00> : vector<2xf32>
    %46 = vector.multi_reduction <add>, %45, %cst_16 [1] : vector<2x128xf32> to vector<2xf32>
    %47 = vector.shape_cast %46 : vector<2xf32> to vector<2x1xf32>
    %cst_17 = arith.constant 1.000000e+00 : f32
    %48 = vector.broadcast %cst_17 : f32 to vector<2x1xf32>
    %49 = arith.addf %47, %48 : vector<2x1xf32>
    %cst_18 = arith.constant 0.000000e+00 : f32
    %50 = vector.broadcast %cst_18 : f32 to vector<2x1xf32>
    %51 = arith.maximumf %49, %50 : vector<2x1xf32>
    %cst_19 = arith.constant 0.000000e+00 : f32
    %52 = vector.broadcast %cst_19 : f32 to vector<2x1xf32>
    %53 = arith.select %18, %51, %52 : vector<2x1xi1>, vector<2x1xf32>
    %cst_20 = arith.constant dense<0.000000e+00> : vector<1xf32>
    %54 = vector.multi_reduction <add>, %53, %cst_20 [0] : vector<2x1xf32> to vector<1xf32>
    %55 = vector.shape_cast %54 : vector<1xf32> to vector<1x1xf32>
    %56 = arith.addf %38, %55 : vector<1x1xf32>
    %c64_i32_21 = arith.constant 64 : i32
    %57 = vector.broadcast %c64_i32_21 : i32 to vector<2x128xi32>
    %58 = arith.cmpi sge, %19, %57 : vector<2x128xi32>
    %c96_i32 = arith.constant 96 : i32
    %59 = vector.broadcast %c96_i32 : i32 to vector<2x128xi32>
    %60 = arith.cmpi slt, %19, %59 : vector<2x128xi32>
    %61 = arith.andi %58, %60 : vector<2x128xi1>
    %cst_22 = arith.constant 0.000000e+00 : f32
    %62 = vector.broadcast %cst_22 : f32 to vector<2x128xf32>
    %63 = arith.select %61, %10, %62 : vector<2x128xi1>, vector<2x128xf32>
    %cst_23 = arith.constant dense<0.000000e+00> : vector<2xf32>
    %64 = vector.multi_reduction <add>, %63, %cst_23 [1] : vector<2x128xf32> to vector<2xf32>
    %65 = vector.shape_cast %64 : vector<2xf32> to vector<2x1xf32>
    %cst_24 = arith.constant 1.000000e+00 : f32
    %66 = vector.broadcast %cst_24 : f32 to vector<2x1xf32>
    %67 = arith.addf %65, %66 : vector<2x1xf32>
    %cst_25 = arith.constant 0.000000e+00 : f32
    %68 = vector.broadcast %cst_25 : f32 to vector<2x1xf32>
    %69 = arith.maximumf %67, %68 : vector<2x1xf32>
    %cst_26 = arith.constant 0.000000e+00 : f32
    %70 = vector.broadcast %cst_26 : f32 to vector<2x1xf32>
    %71 = arith.select %18, %69, %70 : vector<2x1xi1>, vector<2x1xf32>
    %cst_27 = arith.constant dense<0.000000e+00> : vector<1xf32>
    %72 = vector.multi_reduction <add>, %71, %cst_27 [0] : vector<2x1xf32> to vector<1xf32>
    %73 = vector.shape_cast %72 : vector<1xf32> to vector<1x1xf32>
    %74 = arith.addf %56, %73 : vector<1x1xf32>
    %c96_i32_28 = arith.constant 96 : i32
    %75 = vector.broadcast %c96_i32_28 : i32 to vector<2x128xi32>
    %76 = arith.cmpi sge, %19, %75 : vector<2x128xi32>
    %c128_i32 = arith.constant 128 : i32
    %77 = vector.broadcast %c128_i32 : i32 to vector<2x128xi32>
    %78 = arith.cmpi slt, %19, %77 : vector<2x128xi32>
    %79 = arith.andi %76, %78 : vector<2x128xi1>
    %cst_29 = arith.constant 0.000000e+00 : f32
    %80 = vector.broadcast %cst_29 : f32 to vector<2x128xf32>
    %81 = arith.select %79, %10, %80 : vector<2x128xi1>, vector<2x128xf32>
    %cst_30 = arith.constant dense<0.000000e+00> : vector<2xf32>
    %82 = vector.multi_reduction <add>, %81, %cst_30 [1] : vector<2x128xf32> to vector<2xf32>
    %83 = vector.shape_cast %82 : vector<2xf32> to vector<2x1xf32>
    %cst_31 = arith.constant 1.000000e+00 : f32
    %84 = vector.broadcast %cst_31 : f32 to vector<2x1xf32>
    %85 = arith.addf %83, %84 : vector<2x1xf32>
    %cst_32 = arith.constant 0.000000e+00 : f32
    %86 = vector.broadcast %cst_32 : f32 to vector<2x1xf32>
    %87 = arith.maximumf %85, %86 : vector<2x1xf32>
    %cst_33 = arith.constant 0.000000e+00 : f32
    %88 = vector.broadcast %cst_33 : f32 to vector<2x1xf32>
    %89 = arith.select %18, %87, %88 : vector<2x1xi1>, vector<2x1xf32>
    %cst_34 = arith.constant dense<0.000000e+00> : vector<1xf32>
    %90 = vector.multi_reduction <add>, %89, %cst_34 [0] : vector<2x1xf32> to vector<1xf32>
    %91 = vector.shape_cast %90 : vector<1xf32> to vector<1x1xf32>
    %92 = arith.addf %74, %91 : vector<1x1xf32>
    %c0_35 = arith.constant 0 : index
    %c0_36 = arith.constant 0 : index
    %c0_37 = arith.constant 0 : index
    %93 = vector.load %arg5[%c0_35, %c0_36, %c0_37] : memref<1x1x1xf32, #tpu.memory_space<vmem>>, vector<1x1x1xf32>
    %94 = vector.shape_cast %93 : vector<1x1x1xf32> to vector<1x1xf32>
    %95 = arith.addf %94, %92 : vector<1x1xf32>
    %c0_38 = arith.constant 0 : index
    %c0_39 = arith.constant 0 : index
    %c0_40 = arith.constant 0 : index
    %96 = vector.load %arg5[%c0_38, %c0_39, %c0_40] : memref<1x1x1xf32, #tpu.memory_space<vmem>>, vector<1x1x1xf32>
    %97 = vector.shape_cast %96 : vector<1x1x1xf32> to vector<1x1xf32>
    %98 = vector.shape_cast %95 : vector<1x1xf32> to vector<1x1x1xf32>
    tpu.vector_store %arg5[%c0_38, %c0_39, %c0_40], %98 {strides = array<i32>} : memref<1x1x1xf32, #tpu.memory_space<vmem>>, vector<1x1x1xf32>,
    return
  }
  func.func @transform_0(%arg0: i32, %arg1: i32) -> (i32, i32) {
    %c1_i32 = arith.constant 1 : i32
    %0 = arith.muli %arg0, %c1_i32 : i32
    %1 = arith.addi %0, %arg1 : i32
    %c0_i32 = arith.constant 0 : i32
    %2 = arith.minsi %1, %c0_i32 : i32
    %c0_i32_0 = arith.constant 0 : i32
    %c0_i32_1 = arith.constant 0 : i32
    return %2, %c0_i32_0 : i32, i32
  }
  func.func @transform_1(%arg0: i32, %arg1: i32) -> (i32, i32) {
    %c1_i32 = arith.constant 1 : i32
    %0 = arith.muli %arg0, %c1_i32 : i32
    %1 = arith.addi %0, %arg1 : i32
    %c0_i32 = arith.constant 0 : i32
    %2 = arith.minsi %1, %c0_i32 : i32
    %c0_i32_0 = arith.constant 0 : i32
    %c0_i32_1 = arith.constant 0 : i32
    return %2, %c0_i32_0 : i32, i32
  }
  func.func @transform_2(%arg0: i32, %arg1: i32) -> (i32, i32) {
    %c1_i32 = arith.constant 1 : i32
    %0 = arith.muli %arg0, %c1_i32 : i32
    %1 = arith.addi %0, %arg1 : i32
    %c0_i32 = arith.constant 0 : i32
    %2 = arith.minsi %1, %c0_i32 : i32
    %c0_i32_0 = arith.constant 0 : i32
    %c0_i32_1 = arith.constant 0 : i32
    return %2, %c0_i32_0 : i32, i32
  }
  func.func @transform_3(%arg0: i32, %arg1: i32) -> (i32, i32, i32) {
    %c0_i32 = arith.constant 0 : i32
    %c0_i32_0 = arith.constant 0 : i32
    %c0_i32_1 = arith.constant 0 : i32
    return %arg0, %c0_i32, %c0_i32_0 : i32, i32, i32
  }
}

</mosaic_0001>

<bundles_post_ra>
// kernel: tpu_custom_call.1
= control target key start
LH: loop header
LB: loop body
LE: loop exit
PB: predicated region body
PF: predicated region fallthrough
CT: control target
= control target key end

     0   :  { %8 = vsyncpa [#allocation3], 0  ;;  %s328_s0 = inlined_call_operand.hbm [shape: f32[2,128], index: 0, kind: input, shape index: {}]   ;;  %s329_s1 = inlined_call_operand.hbm [shape: f32[2,128], index: 1, kind: input, shape index: {}]   ;;  %s330_s2 = inlined_call_operand.vmem [shape: f32[2,128], index: 2, kind: input, shape index: {}]   ;;  %s331_s3 = inlined_call_operand.hbm [shape: f32[1,1,1], index: 3, kind: output, shape index: {}]  }
   0x1   :  { %9 = vsyncpa [#allocation6], 0 }
   0x2   :  { %10 = vsyncpa [#allocation4], 0  ;;  %s278_s12 = smov [#allocation2]   ;;  %s279_s14 = smov [#allocation5]  }
   0x3   :  { %s22_s13 = sshll.u32 %s278_s12, 4  ;;  %s37_s15 = sshll.u32 %s279_s14, 4  ;;  %s23_s13 = int_to_ptr.vmem [resolvable:$true] %s22_s13  ;;  %s38_s15 = int_to_ptr.vmem [resolvable:$true] %s37_s15 }
   0x4   :  { %s220_s16 = scalar_lea.vmem %s23_s13, 32  ;;  %p225_p1 = scmp.lt.s32.totalorder %s23_s13, %s23_s13 }
   0x5   :  { %p221_p0 = scmp.ne.s32.totalorder %s23_s13, %s220_s16  ;;  %p226_p2 = scmp.lt.s32.totalorder %s220_s16, %s220_s16 }
   0x7   :  { %p227_p3 = por %p226_p2, %p225_p1 }
   0x9   :  { %p228_p4 = pnand %p227_p3, %p221_p0 }
   0xb   :  { %231 = shalt.err (!%p228_p4)
}
   0xc   :  { %25 = dma.hbm_to_vmem [thread:$0]  %s328_s0, 32, %s23_s13, [#allocation3]  }
   0xd   :  { %s240_s19 = scalar_lea.vmem %s38_s15, 32  ;;  %p245_p6 = scmp.lt.s32.totalorder %s38_s15, %s38_s15 }
   0xe   :  { %p241_p5 = scmp.ne.s32.totalorder %s38_s15, %s240_s19  ;;  %p246_p7 = scmp.lt.s32.totalorder %s240_s19, %s240_s19 }
  0x10   :  { %p247_p8 = por %p246_p7, %p245_p6 }
  0x12   :  { %p248_p9 = pnand %p247_p8, %p241_p5 }
  0x14   :  { %251 = shalt.err (!%p248_p9)
}
  0x15   :  { %40 = dma.hbm_to_vmem [thread:$0]  %s329_s1, 32, %s38_s15, [#allocation6]  }
  0x16   :  { %272 = dma.done.wait [#allocation3], 32  }
  0x17   :  { %273 = vsyncadd [#allocation3], 4294967264 }
  0x18   :  { %274 = dma.done.wait [#allocation6], 32  }
  0x19   :  { %275 = vsyncadd [#allocation6], 4294967264  ;;  %v98_v0 = vlaneseq  ;;  %v88_v2 = vld [vmem:[#allocation2] sm:$0x3]  ;;  %v89_v3 = vld [vmem:[#allocation5] sm:$0x3] }
  0x1a   :  { %v90_v4 = vld [vmem:[%s330_s2] sm:$0x3]  ;;  %v91_v5 = vsub.f32 %v88_v2, %v89_v3  ;;  %vm109_vm8 = vcmask 1041408   ;;  %vm86_vm9 = vcmask 0   ;;  %v280_v18 = vmov 0.0   ;;  %s281_s1 = smov [#allocation7]  }
  0x1b   :  { %v104_v1 = vand.u32 127, %v98_v0  ;;  %v92_v6 = vsub.f32 %v88_v2, %v90_v4  ;;  %87 = vst.msk [vmem:[#allocation7] sm:$0x1] %vm86_vm9, %v280_v18  ;;  %v99_v19 = vshrl.u32 %v98_v0, 7  ;;  %s188_s2 = sshll.u32 %s281_s1, 4  ;;  %s189_s2 = int_to_ptr.vmem [resolvable:$true] %s188_s2 }
  0x1c   :  { %v93_v7 = vmul.f32 %v91_v5, %v91_v5  ;;  %s252_s23 = scalar_lea.vmem %s189_s2, 16  ;;  %s256_s24 = scalar_lea.vmem %s189_s2, 32 }
  0x1d   :  { %vm142_vm0 = vcmp.ge.s32.totalorder %v104_v1, 64  ;;  %vm143_vm1 = vcmp.lt.s32.totalorder %v104_v1, 96  ;;  %vm124_vm2 = vcmp.ge.s32.totalorder %v104_v1, 32  ;;  %vm125_vm3 = vcmp.lt.s32.totalorder %v104_v1, 64  ;;  %p253_p10 = scmp.ne.s32.totalorder %s189_s2, %s252_s23  ;;  %p257_p11 = scmp.lt.s32.totalorder %s189_s2, %s189_s2 }
  0x1e   :  { %v94_v8 = vmul.f32 %v92_v6, %v92_v6  ;;  %vm144_vm4 = vmand %vm142_vm0, %vm143_vm1  ;;  %vm106_vm5 = vcmp.lt.s32.totalorder %v104_v1, 32  ;;  %vm160_vm6 = vcmp.ge.s32.totalorder %v104_v1, 96  ;;  %vm102_vm10 = vcmp.lt.s32.totalorder %v99_v19, 2  ;;  %p258_p12 = scmp.lt.s32.totalorder %s256_s24, %s252_s23 }
  0x1f   :  { %vm126_vm7 = vmand %vm124_vm2, %vm125_vm3 }
  0x20   :  { %v95_v9 = vsub.f32 %v93_v7, %v94_v8  ;;  %p259_p13 = por %p258_p12, %p257_p11 }
  0x22   :  { %v145_v10 = vsel %vm144_vm4, %v95_v9, 0.0  ;;  %v108_v11 = vsel %vm106_vm5, %v95_v9, 0.0  ;;  %v163_v12 = vsel %vm160_vm6, %v95_v9, 0.0  ;;  %v127_v13 = vsel %vm126_vm7, %v95_v9, 0.0  ;;  %v178_v2 = vld [vmem:[#allocation7] sm:$0x1]  ;;  %p260_p0 = pnand %p259_p13, %p253_p10 }
  0x23   :  { %v146_v14 = vsel %vm109_vm8, %v145_v10, 0.0  ;;  %v110_v15 = vsel %vm109_vm8, %v108_v11, 0.0  ;;  %v164_v16 = vsel %vm109_vm8, %v163_v12, 0.0  ;;  %v128_v17 = vsel %vm109_vm8, %v127_v13, 0.0 }
  0x24   :  { %147 = vadd.xlane.f32.xlu1 %v146_v14  ;;  %111 = vadd.xlane.f32.xlu0 %v110_v15 }
  0x28   :  { %165 = vadd.xlane.f32.xlu1 %v164_v16  ;;  %129 = vadd.xlane.f32.xlu0 %v128_v17 }
  0xad   :  { %v148_v20 = vpop.xlane.xlu1 %147  ;;  %v112_v21 = vpop.xlane.xlu0 %111 }
  0xae   :  { %v149_v22 = vadd.f32 1.0, %v148_v20  ;;  %v113_v23 = vadd.f32 1.0, %v112_v21 }
  0xb0   :  { %v150_v24 = vmax.f32 %v149_v22, 0.0  ;;  %v114_v25 = vmax.f32 %v113_v23, 0.0 }
  0xb1   :  { %v166_v26 = vpop.xlane.xlu1 %165  ;;  %v130_v27 = vpop.xlane.xlu0 %129 }
  0xb2   :  { %v151_v28 = vsel %vm102_vm10, %v150_v24, 0.0  ;;  %v115_v29 = vsel %vm102_vm10, %v114_v25, 0.0  ;;  %v167_v30 = vadd.f32 1.0, %v166_v26  ;;  %v131_v31 = vadd.f32 1.0, %v130_v27 }
  0xb3   :  { %v152_v32 = vsel %vm109_vm8, %v151_v28, 0.0  ;;  %v116_v33 = vsel %vm109_vm8, %v115_v29, 0.0 }
  0xb4   :  { %v153_v34 = vrot.slane %v152_v32, 4  ;;  %v117_v35 = vrot.slane %v116_v33, 4  ;;  %v168_v36 = vmax.f32 %v167_v30, 0.0  ;;  %v132_v37 = vmax.f32 %v131_v31, 0.0 }
  0xb6   :  { %v154_v38 = vadd.f32 %v153_v34, %v152_v32  ;;  %v118_v39 = vadd.f32 %v117_v35, %v116_v33  ;;  %v169_v40 = vsel %vm102_vm10, %v168_v36, 0.0  ;;  %v133_v41 = vsel %vm102_vm10, %v132_v37, 0.0 }
  0xb7   :  { %v170_v42 = vsel %vm109_vm8, %v169_v40, 0.0  ;;  %v134_v43 = vsel %vm109_vm8, %v133_v41, 0.0 }
  0xb8   :  { %v155_v44 = vrot.slane %v154_v38, 2  ;;  %v119_v45 = vrot.slane %v118_v39, 2  ;;  %v171_v46 = vrot.slane %v170_v42, 4  ;;  %v135_v47 = vrot.slane %v134_v43, 4 }
  0xba   :  { %v120_v48 = vadd.f32 %v119_v45, %v118_v39  ;;  %v172_v49 = vadd.f32 %v171_v46, %v170_v42  ;;  %v136_v50 = vadd.f32 %v135_v47, %v134_v43  ;;  %v156_v51 = vadd.f32 %v155_v44, %v154_v38 }
  0xbc   :  { %v173_v52 = vrot.slane %v172_v49, 2  ;;  %v137_v53 = vrot.slane %v136_v50, 2  ;;  %v121_v54 = vrot.slane %v120_v48, 1  ;;  %v157_v57 = vrot.slane %v156_v51, 1 }
  0xbe   :  { %v174_v55 = vadd.f32 %v173_v52, %v172_v49  ;;  %v138_v56 = vadd.f32 %v137_v53, %v136_v50  ;;  %v122_v59 = vadd.f32 %v121_v54, %v120_v48  ;;  %v158_v62 = vadd.f32 %v157_v57, %v156_v51 }
  0xc0   :  { %v139_v58 = vrot.slane %v138_v56, 1  ;;  %v175_v60 = vrot.slane %v174_v55, 1 }
  0xc2   :  { %v140_v61 = vadd.f32 %v139_v58, %v138_v56  ;;  %v176_v0 = vadd.f32 %v175_v60, %v174_v55 }
  0xc4   :  { %v141_v63 = vadd.f32 %v140_v61, %v122_v59 }
  0xc6   :  { %v159_v1 = vadd.f32 %v158_v62, %v141_v63 }
  0xc8   :  { %v177_v3 = vadd.f32 %v176_v0, %v159_v1 }
  0xca   :  { %v179_v4 = vadd.f32 %v178_v2, %v177_v3 }
  0xcc   :  { %181 = vst.msk [vmem:[#allocation7] sm:$0x1] %vm86_vm9, %v179_v4 }
  0xcd   :  { %263 = shalt.err (!%p260_p0)
}
  0xce   :  { %191 = dma.vmem_to_hbm [thread:$0]  %s189_s2, 16, %s331_s3, [#allocation4]  }
  0xcf   :  { %276 = dma.done.wait [#allocation4], 16  }
  0xd0   :  { %277 = vsyncadd [#allocation4], 4294967280 }
  0xd1   :  { %195 = vsyncpa [#allocation3], 1 }
  0xd2   :  { %196 = vsyncpa [#allocation6], 1 }
  0xd3   :  { %197 = vsyncpa [#allocation4], 1 }

</bundles_post_ra>
